<compile_context>
chip_gen: v7x
topology: tpu7x:2x2x1
jax: 0.10.0
libtpu: 0.0.40
codegen_flags: <defaults>
</compile_context>

<pallas_src>
import functools

import jax
import jax.numpy as jnp
from jax.experimental import pallas as pl
from jax.experimental.pallas import tpu as pltpu


def _swish_kernel(x_ref, o_ref, *, beta):
    x = x_ref[...]
    xf = x.astype(jnp.float32)
    # sigmoid(beta*x) == 0.5 * tanh(0.5*beta*x) + 0.5  -> exactly one EUP op.
    sig = 0.5 * jnp.tanh((0.5 * beta) * xf) + 0.5
    o_ref[...] = (xf * sig).astype(o_ref.dtype)


def _physical_vmem_bytes() -> int:
    try:
        info = pltpu.get_tpu_info()
        v = getattr(info, "vmem_capacity_bytes", None)
        if v:
            return int(v)
    except Exception:
        pass
    return 64 << 20  # v7x-safe fallback


def _pick_lanes(total: int, max_lanes: int = 2048) -> int:
    """Largest multiple of 128 (<= max_lanes) that divides `total`, else 0."""
    best = 0
    l = 128
    while l <= max_lanes:
        if total % l == 0:
            best = l
        l += 128
    return best


def _swish_2d(x2: jax.Array, beta: float, *, target_block_bytes: int,
              vmem_cap: int) -> jax.Array:
    """Runs the Swish kernel on a lane-dense (rows, lanes) slab."""
    rows, lanes = x2.shape
    dtype = x2.dtype
    itemsize = jnp.dtype(dtype).itemsize
    # Native sublane tile: 8 rows for f32, 16 for bf16, 32 for int8/fp8.
    sublane = max(8, 32 // itemsize)

    if rows <= sublane:
        block_rows = rows  # full extent (allowed even if not a multiple of 8)
    else:
        block_rows = target_block_bytes // (lanes * itemsize)
        block_rows = max(sublane, (block_rows // sublane) * sublane)
        if rows >= 4 * sublane:
            # >= 4 grid steps: each v7x TensorCore gets >= 2 blocks, so the
            # per-core pipeline stays double-buffered.
            cap = max(sublane, ((rows // 4) // sublane) * sublane)
            block_rows = min(block_rows, cap)
        block_rows = min(block_rows, rows)

    grid = (pl.cdiv(rows, block_rows),)

    # VMEM budget: double-buffered input + output tiles, plus headroom.
    tile_bytes = block_rows * lanes * itemsize
    vmem_limit = min(max(4 * tile_bytes + (2 << 20), 32 << 20), vmem_cap)

    n = rows * lanes
    cost = pl.CostEstimate(
        flops=4 * n,
        transcendentals=n,
        bytes_accessed=2 * n * itemsize,
    )

    kernel = functools.partial(_swish_kernel, beta=float(beta))
    return pl.pallas_call(
        kernel,
        out_shape=jax.ShapeDtypeStruct((rows, lanes), dtype),
        grid_spec=pltpu.PrefetchScalarGridSpec(
            num_scalar_prefetch=0,
            grid=grid,
            in_specs=[pl.BlockSpec((block_rows, lanes), lambda i: (i, 0))],
            out_specs=pl.BlockSpec((block_rows, lanes), lambda i: (i, 0)),
        ),
        compiler_params=pltpu.CompilerParams(
            dimension_semantics=("parallel",),
            vmem_limit_bytes=vmem_limit,
        ),
        cost_estimate=cost,
    )(x2)


def swish(x: jax.Array, beta: float, *, max_lanes: int = 2048,
          target_block_bytes: int | None = None) -> jax.Array:
    """Applies Swish (x * sigmoid(beta * x)) elementwise to any-shape array."""
    orig_shape = x.shape
    total = x.size
    if total == 0:
        return x

    # Generation-aware VMEM budget and tile size.
    phys_vmem = _physical_vmem_bytes()
    vmem_cap = min((phys_vmem * 3) // 4, 96 << 20)
    if target_block_bytes is None:
        target_block_bytes = (12 << 20) if phys_vmem >= (100 << 20) else (8 << 20)
    target_block_bytes = min(
        target_block_bytes, max(1 << 20, (vmem_cap - (2 << 20)) // 4))

    flat = x.reshape(-1)

    # Preferred path: pick a lane width that divides the element count so the
    # reshape to a lane-dense slab is zero-copy (no pad / no slice).
    lanes = _pick_lanes(total, max_lanes)
    if lanes:
        out2 = _swish_2d(flat.reshape(total // lanes, lanes), beta,
                         target_block_bytes=target_block_bytes,
                         vmem_cap=vmem_cap)
        return out2.reshape(orig_shape)

    # Ragged path: process the 128-aligned prefix zero-copy; pad only the
    # < 128-element tail (tiny second call), then stitch the two back together.
    aligned = (total // 128) * 128
    parts = []
    if aligned:
        prefix = flat[:aligned].reshape(aligned // 128, 128)
        parts.append(
            _swish_2d(prefix, beta, target_block_bytes=target_block_bytes,
                      vmem_cap=vmem_cap).reshape(-1))
    tail = total - aligned
    if tail:
        tail_in = jnp.pad(flat[aligned:], (0, 128 - tail)).reshape(1, 128)
        tail_out = _swish_2d(tail_in, beta,
                             target_block_bytes=target_block_bytes,
                             vmem_cap=vmem_cap).reshape(-1)[:tail]
        parts.append(tail_out)
    out_flat = parts[0] if len(parts) == 1 else jnp.concatenate(parts)
    return out_flat.reshape(orig_shape)


if __name__ == "__main__":
    key0, key1, key2 = jax.random.split(jax.random.PRNGKey(0), 3)
    beta = 1.5

    def ref_f32(a):
        af = a.astype(jnp.float32)
        return (af * jax.nn.sigmoid(beta * af)).astype(a.dtype)

    # EGNN-like node features: 8 "nodes" x 32 hidden, f32 (zero-copy path).
    x = jax.random.normal(key0, (8, 32), dtype=jnp.float32)
    out = jax.block_until_ready(swish(x, beta))
    assert out.shape == x.shape and out.dtype == x.dtype
    assert jnp.allclose(out, ref_f32(x), atol=1e-5, rtol=1e-5)

    # Odd shape (total < 128, tail-only ragged path) + bf16 I/O.
    xb = jax.random.normal(key1, (5, 7, 3), dtype=jnp.bfloat16)
    outb = jax.block_until_ready(swish(xb, beta))
    assert outb.shape == xb.shape and outb.dtype == xb.dtype
    assert jnp.allclose(outb.astype(jnp.float32),
                        ref_f32(xb).astype(jnp.float32),
                        atol=2e-2, rtol=2e-2)

    # Ragged shape exercising prefix + tail (210 elements), f32.
    xr = jax.random.normal(key2, (3, 70), dtype=jnp.float32)
    outr = jax.block_until_ready(swish(xr, beta))
    assert outr.shape == xr.shape and outr.dtype == xr.dtype
    assert jnp.allclose(outr, ref_f32(xr), atol=1e-5, rtol=1e-5)

    print("KERNEL_OK")
</pallas_src>

<mosaic_0001>
module attributes {stable_mosaic.version = 11 : i64} {
  func.func @_swish_kernel(%arg0: i32, %arg1: memref<1x256xf32, #tpu.memory_space<vmem>>, %arg2: memref<1x256xf32, #tpu.memory_space<vmem>>) attributes {dimension_semantics = [#tpu.dimension_semantics<parallel>], iteration_bounds = array<i64: 1>, scalar_prefetch = 0 : i64, scratch_operands = 0 : i64, tpu.core_type = #tpu.core_type<tc>, window_params = [{transform_indices = @transform_0, window_bounds = array<i64: 1, 256>}, {transform_indices = @transform_1, window_bounds = array<i64: 1, 256>}]} {
    %c0 = arith.constant 0 : index
    %c0_0 = arith.constant 0 : index
    %0 = vector.load %arg1[%c0, %c0_0] : memref<1x256xf32, #tpu.memory_space<vmem>>, vector<1x256xf32>
    %cst = arith.constant 7.500000e-01 : f32
    %1 = vector.broadcast %cst : f32 to vector<1x256xf32>
    %2 = arith.mulf %1, %0 : vector<1x256xf32>
    %3 = math.tanh %2 : vector<1x256xf32>
    %cst_1 = arith.constant 5.000000e-01 : f32
    %4 = vector.broadcast %cst_1 : f32 to vector<1x256xf32>
    %5 = arith.mulf %4, %3 : vector<1x256xf32>
    %cst_2 = arith.constant 5.000000e-01 : f32
    %6 = vector.broadcast %cst_2 : f32 to vector<1x256xf32>
    %7 = arith.addf %5, %6 : vector<1x256xf32>
    %8 = arith.mulf %0, %7 : vector<1x256xf32>
    %c0_3 = arith.constant 0 : index
    %c0_4 = arith.constant 0 : index
    %9 = vector.load %arg2[%c0_3, %c0_4] : memref<1x256xf32, #tpu.memory_space<vmem>>, vector<1x256xf32>
    tpu.vector_store %arg2[%c0_3, %c0_4], %8 {strides = array<i32>} : memref<1x256xf32, #tpu.memory_space<vmem>>, vector<1x256xf32>,
    return
  }
  func.func @transform_0(%arg0: i32) -> (i32, i32) {
    %c0_i32 = arith.constant 0 : i32
    %c0_i32_0 = arith.constant 0 : i32
    return %arg0, %c0_i32 : i32, i32
  }
  func.func @transform_1(%arg0: i32) -> (i32, i32) {
    %c0_i32 = arith.constant 0 : i32
    %c0_i32_0 = arith.constant 0 : i32
    return %arg0, %c0_i32 : i32, i32
  }
}

</mosaic_0001>

<bundles_post_ra>
// kernel: tpu_custom_call.1
= control target key start
LH: loop header
LB: loop body
LE: loop exit
PB: predicated region body
PF: predicated region fallthrough
CT: control target
= control target key end

     0   :  { %6 = vsyncpa [#allocation3], 0  ;;  %s135_s0 = inlined_call_operand.hbm [shape: f32[1,256], index: 0, kind: input, shape index: {}]   ;;  %s136_s1 = inlined_call_operand.hbm [shape: f32[1,256], index: 1, kind: output, shape index: {}]  }
   0x1   :  { %7 = vsyncpa [#allocation4], 0  ;;  %s99_s6 = smov [#allocation2]   ;;  %s51_s10 = scalar_lea.hbm %s135_s0, 32 }
   0x2   :  { %s14_s7 = sshll.u32 %s99_s6, 4  ;;  %p52_p0 = scmp.ne.s32.totalorder %s135_s0, %s51_s10  ;;  %s15_s7 = int_to_ptr.vmem [resolvable:$true] %s14_s7 }
   0x3   :  { %p55_p1 = scmp.lt.u32.totalorder %s51_s10, %s135_s0 }
   0x5   :  { %p57_p2 = pnand %p55_p1, %p52_p0 }
   0x7   :  { %60 = shalt.err (!%p57_p2)
}
   0x8   :  { %s61_s15 = scalar_lea.vmem %s15_s7, 32  ;;  %p66_p4 = scmp.lt.s32.totalorder %s15_s7, %s15_s7 }
   0x9   :  { %p62_p3 = scmp.ne.s32.totalorder %s15_s7, %s61_s15  ;;  %p67_p5 = scmp.lt.s32.totalorder %s61_s15, %s61_s15 }
   0xb   :  { %p68_p6 = por %p67_p5, %p66_p4 }
   0xd   :  { %p69_p7 = pnand %p68_p6, %p62_p3 }
   0xf   :  { %72 = shalt.err (!%p69_p7)
}
  0x10   :  { %17 = dma.hbm_to_vmem [thread:$0]  %s135_s0, 32, %s15_s7, [#allocation3]  }
  0x11   :  { %95 = dma.done.wait [#allocation3], 32  }
  0x12   :  { %96 = vsyncadd [#allocation3], 4294967264  ;;  %v21_v0 = vld [vmem:[#allocation2] sm:$0x3]  ;;  %v27_v3 = vlaneseq  ;;  %s100_s18 = smov [#allocation5]  }
  0x13   :  { %v22_v1 = vmul.f32 0.75, %v21_v0  ;;  %s38_s19 = sshll.u32 %s100_s18, 4  ;;  %s39_s19 = int_to_ptr.vmem [resolvable:$true] %s38_s19 }
  0x14   :  { %vm29_vm0 = vcmp.lt.s32.totalorder %v27_v3, 256  ;;  %s73_s20 = scalar_lea.vmem %s39_s19, 32  ;;  %p78_p9 = scmp.lt.s32.totalorder %s39_s19, %s39_s19 }
  0x15   :  { %49 = vtanh.f32 %v22_v1  ;;  %p74_p8 = scmp.ne.s32.totalorder %s39_s19, %s73_s20  ;;  %p79_p10 = scmp.lt.s32.totalorder %s73_s20, %s73_s20 }
  0x17   :  { %p80_p11 = por %p79_p10, %p78_p9 }
  0x19   :  { %p81_p12 = pnand %p80_p11, %p74_p8 }
  0x1f   :  { %v50_v2 = vpop.eup %49 }
  0x20   :  { %v24_v4 = vmul.f32 0.5, %v50_v2 }
  0x22   :  { %v25_v5 = vadd.f32 0.5, %v24_v4 }
  0x24   :  { %v26_v6 = vmul.f32 %v25_v5, %v21_v0 }
  0x26   :  { %31 = vst.msk [vmem:[#allocation5] sm:$0x3] %vm29_vm0, %v26_v6 }
  0x27   :  { %84 = shalt.err (!%p81_p12)
}
  0x28   :  { %s85_s22 = scalar_lea.hbm %s136_s1, 32 }
  0x29   :  { %p86_p13 = scmp.ne.s32.totalorder %s136_s1, %s85_s22  ;;  %p89_p0 = scmp.lt.u32.totalorder %s85_s22, %s136_s1 }
  0x2b   :  { %p91_p1 = pnand %p89_p0, %p86_p13 }
  0x2d   :  { %94 = shalt.err (!%p91_p1)
}
  0x2e   :  { %41 = dma.vmem_to_hbm [thread:$0]  %s39_s19, 32, %s136_s1, [#allocation4]  }
  0x2f   :  { %97 = dma.done.wait [#allocation4], 32  }
  0x30   :  { %98 = vsyncadd [#allocation4], 4294967264 }
  0x31   :  { %45 = vsyncpa [#allocation3], 1 }
  0x32   :  { %46 = vsyncpa [#allocation4], 1 }

</bundles_post_ra>
